<compile_context>
chip_gen: v5e
topology: v5e:2x2
jax: 0.10.0
libtpu: 0.0.40
codegen_flags: <defaults>
</compile_context>

<pallas_src>
import math
import functools

import jax
import jax.numpy as jnp
from jax import lax
from jax.experimental import pallas as pl
from jax.experimental.pallas import tpu as pltpu


def _bert_attention_kernel(x_ref,
                           wq_ref, bq_ref,
                           wkv_ref, bkv_ref,
                           wo_ref, bo_ref,
                           gamma_ref, beta_ref,
                           out_ref, *rest,
                           n_heads, d_head, seq_tile, ln_eps, with_probs):
    if with_probs:
        attn_ref, kvT_scr, ctx_scr = rest
    else:
        attn_ref = None
        kvT_scr, ctx_scr = rest

    lt = pl.program_id(1)
    H, dh, TL = n_heads, d_head, seq_tile
    AH = H * dh
    scale = 1.0 / math.sqrt(dh)
    f32, bf16 = jnp.float32, jnp.bfloat16

    # ---- once per batch element: fused K^T | V^T projection over the full sequence.
    #      kvT = [Wk; Wv] @ x^T  -> (2*AH, S): lane-dense cache, sublane-aligned head rows.
    @pl.when(lt == 0)
    def _():
        xb = x_ref[0].astype(bf16)                                        # (S, d_model)
        kvT = lax.dot_general(wkv_ref[...], xb, (((1,), (1,)), ((), ())),
                              preferred_element_type=f32)                 # (2*AH, S) f32
        kvT_scr[...] = (kvT + bkv_ref[...]).astype(bf16)

    # ---- per seq-tile: residual / query rows sliced from the resident full-x block ----
    row0 = pl.multiple_of(lt * TL, TL)
    x_t = x_ref[0, pl.ds(row0, TL), :]                                    # (TL, d_model) f32
    qb = (jnp.dot(x_t.astype(bf16), wq_ref[...],
                  preferred_element_type=f32) + bq_ref[...]).astype(bf16)  # (TL, AH) bf16

    # ---- attention, one head at a time.  Static Python loop (H is small): every head
    #      slice offset is static (no dynamic lane indexing, no staging scratch) and
    #      each body holds several MXU matmuls, so code size stays modest.
    for h in range(H):
        Qh = qb[:, h * dh:(h + 1) * dh]                                   # (TL, dh) bf16
        KhT = kvT_scr[h * dh:(h + 1) * dh, :]                             # (dh, S)  bf16
        VhT = kvT_scr[AH + h * dh:AH + (h + 1) * dh, :]                   # (dh, S)  bf16

        s = jnp.dot(Qh, KhT, preferred_element_type=f32) * scale          # (TL, S) f32
        m = jnp.max(s, axis=-1, keepdims=True)
        e = jnp.exp(s - m)
        A = e / jnp.sum(e, axis=-1, keepdims=True)   # exact denom: probs are user-visible
        if with_probs:
            attn_ref[0, h] = A.astype(attn_ref.dtype)

        ctx = lax.dot_general(A.astype(bf16), VhT, (((1,), (1,)), ((), ())),
                              preferred_element_type=f32)                 # (TL, dh) f32
        ctx_scr[:, h * dh:(h + 1) * dh] = ctx.astype(bf16)

    # ---- BertSelfOutput: ONE wide (K = AH) output projection + bias + residual + LN ----
    y = jnp.dot(ctx_scr[...], wo_ref[...], preferred_element_type=f32) \
        + bo_ref[...] + x_t
    mu = jnp.mean(y, axis=-1, keepdims=True)
    yc = y - mu
    var = jnp.mean(yc * yc, axis=-1, keepdims=True)
    out_ref[0] = (yc * lax.rsqrt(var + ln_eps)) * gamma_ref[...] + beta_ref[...]


def _vmem_budget():
    """Per-generation (seq_tile_cap, vmem_limit_bytes)."""
    try:
        cap_bytes = pltpu.get_tpu_info().vmem_capacity_bytes
    except Exception:
        cap_bytes = 64 * 1024 * 1024          # assume the smallest (v7x) if unknown
    if cap_bytes >= 96 * 1024 * 1024:         # 128-MiB parts: v5e / v6e
        return 256, 96 * 1024 * 1024
    return 128, 48 * 1024 * 1024              # v7x: 64 MiB physical per TensorCore


def _pick_seq_tile(S, cap):
    for t in (512, 256, 128, 64, 32, 16, 8):
        if t <= cap and S % t == 0:
            return t
    return S


def bert_attention_forward(hidden_states, params, n_heads, ln_eps=1e-12,
                           output_attentions=True, attn_dtype=jnp.bfloat16):
    """Pallas forward of BertAttention (self-attention, eval mode).

    Returns (attention_output, attention_probs) when output_attentions=True (matching
    the PyTorch module with attention_mask=None, head_mask=None), else (out, None).
    attention_probs default to bf16 to halve their dominant HBM writeback; pass
    attn_dtype=jnp.float32 for torch-bit-width probs.
    """
    B, S, d_model = hidden_states.shape
    H = n_heads
    assert d_model % H == 0, "hidden size must be a multiple of num heads"
    dh = d_model // H
    AH = H * dh
    tl_cap, vmem_limit = _vmem_budget()
    TL = _pick_seq_tile(S, tl_cap)
    n_lt = S // TL

    f32, bf16 = jnp.float32, jnp.bfloat16
    # MXU operands in bf16 (f32 accumulation in-kernel); biases / LN params stay f32.
    wq_t = params["wq"].T.astype(bf16)                                       # (d_model, AH)
    bq = params["bq"].reshape(1, AH).astype(f32)
    wkv = jnp.concatenate([params["wk"], params["wv"]], axis=0).astype(bf16)  # (2AH, d_model)
    bkv = jnp.concatenate([params["bk"], params["bv"]], axis=0).reshape(2 * AH, 1).astype(f32)
    wo_t = params["wo"].T.astype(bf16)                                       # (AH, d_model)
    bo = params["bo"].reshape(1, d_model).astype(f32)
    gamma = params["ln_gamma"].reshape(1, d_model).astype(f32)
    beta = params["ln_beta"].reshape(1, d_model).astype(f32)

    kernel = functools.partial(_bert_attention_kernel, n_heads=H, d_head=dh,
                               seq_tile=TL, ln_eps=ln_eps,
                               with_probs=output_attentions)

    in_specs = [
        pl.BlockSpec((1, S, d_model), lambda b, lt: (b, 0, 0)),   # x: full seq (K/V source + residual)
        pl.BlockSpec((d_model, AH), lambda b, lt: (0, 0)),        # Wq^T       (bf16, resident)
        pl.BlockSpec((1, AH), lambda b, lt: (0, 0)),              # bq
        pl.BlockSpec((2 * AH, d_model), lambda b, lt: (0, 0)),    # [Wk; Wv]   (bf16, resident)
        pl.BlockSpec((2 * AH, 1), lambda b, lt: (0, 0)),          # [bk; bv]
        pl.BlockSpec((AH, d_model), lambda b, lt: (0, 0)),        # Wo^T       (bf16, resident)
        pl.BlockSpec((1, d_model), lambda b, lt: (0, 0)),         # bo
        pl.BlockSpec((1, d_model), lambda b, lt: (0, 0)),         # LayerNorm gamma
        pl.BlockSpec((1, d_model), lambda b, lt: (0, 0)),         # LayerNorm beta
    ]
    out_specs = [pl.BlockSpec((1, TL, d_model), lambda b, lt: (b, lt, 0))]
    out_shape = [jax.ShapeDtypeStruct((B, S, d_model), f32)]
    if output_attentions:
        out_specs.append(pl.BlockSpec((1, H, TL, S), lambda b, lt: (b, 0, lt, 0)))
        out_shape.append(jax.ShapeDtypeStruct((B, H, S, S), attn_dtype))

    grid_spec = pltpu.PrefetchScalarGridSpec(
        num_scalar_prefetch=0,
        grid=(B, n_lt),
        in_specs=in_specs,
        out_specs=out_specs,
        scratch_shapes=[
            pltpu.VMEM((2 * AH, S), bf16),   # [K^T; V^T] cache (per batch element, lane-dense)
            pltpu.VMEM((TL, AH), bf16),      # per-tile context slab (heads concatenated)
        ],
    )

    attn_bytes = (B * H * S * S * jnp.dtype(attn_dtype).itemsize) if output_attentions else 0
    cost = pl.CostEstimate(
        flops=int(2 * B * S * d_model * 3 * AH          # Q + fused K|V projections
                  + 4 * B * H * S * S * dh              # scores + A@V
                  + 2 * B * S * AH * d_model),          # fused output dense
        transcendentals=int(B * H * S * S),             # softmax exp
        bytes_accessed=int(B * S * d_model * 4          # x read once per batch element
                           + (wq_t.size + wkv.size + wo_t.size) * 2   # bf16 weights (resident)
                           + B * S * d_model * 4        # attention_output
                           + attn_bytes),               # attention_probs writeback
    )

    res = pl.pallas_call(
        kernel,
        grid_spec=grid_spec,
        out_shape=out_shape,
        compiler_params=pltpu.CompilerParams(
            dimension_semantics=("parallel", "arbitrary"),  # lt must stay sequential (K/V cache)
            vmem_limit_bytes=vmem_limit,
        ),
        cost_estimate=cost,
    )(hidden_states.astype(f32), wq_t, bq, wkv, bkv, wo_t, bo, gamma, beta)

    if output_attentions:
        out, attn = res
        return out, attn
    (out,) = res
    return out, None


def _reference_forward(hidden_states, params, n_heads, ln_eps=1e-12):
    """Pure-JAX f32 reference mirroring the PyTorch BertAttention (eval mode)."""
    B, S, d_model = hidden_states.shape
    H = n_heads
    dh = d_model // H

    def lin(x, w, b):
        return x @ w.T + b

    Q = lin(hidden_states, params["wq"], params["bq"]).reshape(B, S, H, dh).transpose(0, 2, 1, 3)
    K = lin(hidden_states, params["wk"], params["bk"]).reshape(B, S, H, dh).transpose(0, 2, 1, 3)
    V = lin(hidden_states, params["wv"], params["bv"]).reshape(B, S, H, dh).transpose(0, 2, 1, 3)

    scores = (Q @ K.transpose(0, 1, 3, 2)) / math.sqrt(dh)
    A = jax.nn.softmax(scores, axis=-1)                                # (B, H, S, S)
    ctx = (A @ V).transpose(0, 2, 1, 3).reshape(B, S, H * dh)
    y = ctx @ params["wo"].T + params["bo"] + hidden_states
    mu = y.mean(-1, keepdims=True)
    var = ((y - mu) ** 2).mean(-1, keepdims=True)
    out = (y - mu) / jnp.sqrt(var + ln_eps) * params["ln_gamma"] + params["ln_beta"]
    return out, A


def init_params(key, d_model, n_heads):
    """torch nn.Linear layout: weight (out_features, in_features), bias (out_features,)."""
    AH = d_model
    ks = jax.random.split(key, 8)

    def lin(kw, kb, fout, fin):
        bound = 1.0 / math.sqrt(fin)
        w = jax.random.uniform(kw, (fout, fin), jnp.float32, -bound, bound)
        b = jax.random.uniform(kb, (fout,), jnp.float32, -bound, bound)
        return w, b

    wq, bq = lin(ks[0], ks[1], AH, d_model)
    wk, bk = lin(ks[2], ks[3], AH, d_model)
    wv, bv = lin(ks[4], ks[5], AH, d_model)
    wo, bo = lin(ks[6], ks[7], d_model, AH)
    return dict(wq=wq, bq=bq, wk=wk, bk=bk, wv=wv, bv=bv, wo=wo, bo=bo,
                ln_gamma=jnp.ones((d_model,), jnp.float32),
                ln_beta=jnp.zeros((d_model,), jnp.float32))


if __name__ == "__main__":
    # Small shapes consistent with the module: batch=2, seq=8, hidden=32, heads=4 -> d_head=8.
    B, S, d_model, n_heads = 2, 8, 32, 4

    key = jax.random.PRNGKey(0)
    kx, kp = jax.random.split(key)
    hidden_states = jax.random.normal(kx, (B, S, d_model), jnp.float32)
    params = init_params(kp, d_model, n_heads)

    out, attn = bert_attention_forward(hidden_states, params, n_heads)
    out = jax.block_until_ready(out)
    attn = jax.block_until_ready(attn)

    ref_out, ref_attn = _reference_forward(hidden_states, params, n_heads)
    assert out.shape == (B, S, d_model) and out.dtype == jnp.float32
    assert attn.shape == (B, n_heads, S, S)
    # bf16 MXU operands + bf16 probs output => relaxed tolerance vs the f32 reference.
    err_out = float(jnp.max(jnp.abs(out - ref_out)))
    err_attn = float(jnp.max(jnp.abs(attn.astype(jnp.float32) - ref_attn)))
    assert err_out < 3e-2, err_out
    assert err_attn < 3e-2, err_attn

    # Probs-free path (skips the dominant B*H*S*S writeback entirely).
    out2, attn2 = bert_attention_forward(hidden_states, params, n_heads,
                                         output_attentions=False)
    out2 = jax.block_until_ready(out2)
    assert attn2 is None
    assert float(jnp.max(jnp.abs(out2 - ref_out))) < 3e-2

    print("KERNEL_OK")
</pallas_src>

<mosaic_0001>
module attributes {stable_mosaic.version = 11 : i64} {
  func.func @_bert_attention_kernel(%arg0: i32, %arg1: i32, %arg2: memref<1x8x32xf32, #tpu.memory_space<vmem>>, %arg3: memref<32x32xbf16, #tpu.memory_space<vmem>>, %arg4: memref<1x32xf32, #tpu.memory_space<vmem>>, %arg5: memref<64x32xbf16, #tpu.memory_space<vmem>>, %arg6: memref<64x1xf32, #tpu.memory_space<vmem>>, %arg7: memref<32x32xbf16, #tpu.memory_space<vmem>>, %arg8: memref<1x32xf32, #tpu.memory_space<vmem>>, %arg9: memref<1x32xf32, #tpu.memory_space<vmem>>, %arg10: memref<1x32xf32, #tpu.memory_space<vmem>>, %arg11: memref<1x8x32xf32, #tpu.memory_space<vmem>>, %arg12: memref<1x4x8x8xbf16, #tpu.memory_space<vmem>>, %arg13: memref<64x8xbf16, #tpu.memory_space<vmem>>, %arg14: memref<8x32xbf16, #tpu.memory_space<vmem>>) attributes {dimension_semantics = [#tpu.dimension_semantics<parallel>, #tpu.dimension_semantics<arbitrary>], iteration_bounds = array<i64: 2, 1>, scalar_prefetch = 0 : i64, scratch_operands = 2 : i64, tpu.core_type = #tpu.core_type<tc>, window_params = [{transform_indices = @transform_0, window_bounds = array<i64: 1, 8, 32>}, {pipeline_mode = #tpu.pipeline_mode<synchronous>, transform_indices = @transform_1, window_bounds = array<i64: 32, 32>}, {pipeline_mode = #tpu.pipeline_mode<synchronous>, transform_indices = @transform_2, window_bounds = array<i64: 1, 32>}, {pipeline_mode = #tpu.pipeline_mode<synchronous>, transform_indices = @transform_3, window_bounds = array<i64: 64, 32>}, {pipeline_mode = #tpu.pipeline_mode<synchronous>, transform_indices = @transform_4, window_bounds = array<i64: 64, 1>}, {pipeline_mode = #tpu.pipeline_mode<synchronous>, transform_indices = @transform_5, window_bounds = array<i64: 32, 32>}, {pipeline_mode = #tpu.pipeline_mode<synchronous>, transform_indices = @transform_6, window_bounds = array<i64: 1, 32>}, {pipeline_mode = #tpu.pipeline_mode<synchronous>, transform_indices = @transform_7, window_bounds = array<i64: 1, 32>}, {pipeline_mode = #tpu.pipeline_mode<synchronous>, transform_indices = @transform_8, window_bounds = array<i64: 1, 32>}, {transform_indices = @transform_9, window_bounds = array<i64: 1, 8, 32>}, {transform_indices = @transform_10, window_bounds = array<i64: 1, 4, 8, 8>}]} {
    %c0_i32 = arith.constant 0 : i32
    %0 = arith.cmpi eq, %arg1, %c0_i32 : i32
    %1 = arith.extui %0 : i1 to i32
    %c0_i32_0 = arith.constant 0 : i32
    %2 = arith.cmpi ne, %1, %c0_i32_0 : i32
    scf.if %2 {
      %c0_75 = arith.constant 0 : index
      %c0_76 = arith.constant 0 : index
      %c0_77 = arith.constant 0 : index
      %139 = vector.load %arg2[%c0_75, %c0_76, %c0_77] : memref<1x8x32xf32, #tpu.memory_space<vmem>>, vector<1x8x32xf32>
      %140 = vector.shape_cast %139 : vector<1x8x32xf32> to vector<8x32xf32>
      %141 = arith.truncf %140 : vector<8x32xf32> to vector<8x32xbf16>
      %c0_78 = arith.constant 0 : index
      %c0_79 = arith.constant 0 : index
      %142 = vector.load %arg5[%c0_78, %c0_79] : memref<64x32xbf16, #tpu.memory_space<vmem>>, vector<64x32xbf16>
      %cst_80 = arith.constant dense<0.000000e+00> : vector<64x8xf32>
      %143 = tpu.matmul %142, %141, %cst_80 {dimension_numbers = #tpu.dot_dimension_numbers<[1], [1], [0], [0], [0, 0, 1, 0], [], []>} : vector<64x32xbf16>, vector<8x32xbf16>, vector<64x8xf32> -> vector<64x8xf32>
      %c0_81 = arith.constant 0 : index
      %c0_82 = arith.constant 0 : index
      %144 = vector.load %arg6[%c0_81, %c0_82] : memref<64x1xf32, #tpu.memory_space<vmem>>, vector<64x1xf32>
      %145 = vector.broadcast %144 : vector<64x1xf32> to vector<64x8xf32>
      %146 = arith.addf %143, %145 : vector<64x8xf32>
      %147 = arith.truncf %146 : vector<64x8xf32> to vector<64x8xbf16>
      %c0_83 = arith.constant 0 : index
      %c0_84 = arith.constant 0 : index
      %148 = vector.load %arg13[%c0_83, %c0_84] : memref<64x8xbf16, #tpu.memory_space<vmem>>, vector<64x8xbf16>
      tpu.vector_store %arg13[%c0_83, %c0_84], %147 {strides = array<i32>} : memref<64x8xbf16, #tpu.memory_space<vmem>>, vector<64x8xbf16>,
    } else {
    }
    %c8_i32 = arith.constant 8 : i32
    %3 = arith.muli %arg1, %c8_i32 : i32
    %4 = tpu.assume_multiple %3, 8 : i32
    %c0 = arith.constant 0 : index
    %5 = arith.index_cast %4 : i32 to index
    %c0_1 = arith.constant 0 : index
    %6 = vector.load %arg2[%c0, %5, %c0_1] : memref<1x8x32xf32, #tpu.memory_space<vmem>>, vector<1x8x32xf32>
    %7 = vector.shape_cast %6 : vector<1x8x32xf32> to vector<8x32xf32>
    %8 = arith.truncf %7 : vector<8x32xf32> to vector<8x32xbf16>
    %c0_2 = arith.constant 0 : index
    %c0_3 = arith.constant 0 : index
    %9 = vector.load %arg3[%c0_2, %c0_3] : memref<32x32xbf16, #tpu.memory_space<vmem>>, vector<32x32xbf16>
    %cst = arith.constant dense<0.000000e+00> : vector<8x32xf32>
    %10 = tpu.matmul %8, %9, %cst {dimension_numbers = #tpu.dot_dimension_numbers<[1], [0], [0], [1], [0, 0, 1, 1], [], []>} : vector<8x32xbf16>, vector<32x32xbf16>, vector<8x32xf32> -> vector<8x32xf32>
    %c0_4 = arith.constant 0 : index
    %c0_5 = arith.constant 0 : index
    %11 = vector.load %arg4[%c0_4, %c0_5] : memref<1x32xf32, #tpu.memory_space<vmem>>, vector<1x32xf32>
    %12 = vector.broadcast %11 : vector<1x32xf32> to vector<8x32xf32>
    %13 = arith.addf %10, %12 : vector<8x32xf32>
    %14 = arith.truncf %13 : vector<8x32xf32> to vector<8x32xbf16>
    %15 = vector.extract_strided_slice %14 {offsets = [0, 0], sizes = [8, 8], strides = [1, 1]} : vector<8x32xbf16> to vector<8x8xbf16>
    %c0_6 = arith.constant 0 : index
    %c0_7 = arith.constant 0 : index
    %16 = vector.load %arg13[%c0_6, %c0_7] : memref<64x8xbf16, #tpu.memory_space<vmem>>, vector<8x8xbf16>
    %c32 = arith.constant 32 : index
    %c0_8 = arith.constant 0 : index
    %17 = vector.load %arg13[%c32, %c0_8] : memref<64x8xbf16, #tpu.memory_space<vmem>>, vector<8x8xbf16>
    %cst_9 = arith.constant dense<0.000000e+00> : vector<8x8xf32>
    %18 = tpu.matmul %15, %16, %cst_9 {dimension_numbers = #tpu.dot_dimension_numbers<[1], [0], [0], [1], [0, 0, 1, 1], [], []>} : vector<8x8xbf16>, vector<8x8xbf16>, vector<8x8xf32> -> vector<8x8xf32>
    %cst_10 = arith.constant 0.353553385 : f32
    %19 = vector.broadcast %cst_10 : f32 to vector<8x8xf32>
    %20 = arith.mulf %18, %19 : vector<8x8xf32>
    %cst_11 = arith.constant dense<0xFF800000> : vector<8xf32>
    %21 = vector.multi_reduction <maximumf>, %20, %cst_11 [1] : vector<8x8xf32> to vector<8xf32>
    %22 = vector.shape_cast %21 : vector<8xf32> to vector<8x1xf32>
    %23 = vector.broadcast %22 : vector<8x1xf32> to vector<8x8xf32>
    %24 = arith.subf %20, %23 : vector<8x8xf32>
    %25 = math.exp %24 : vector<8x8xf32>
    %cst_12 = arith.constant dense<0.000000e+00> : vector<8xf32>
    %26 = vector.multi_reduction <add>, %25, %cst_12 [1] : vector<8x8xf32> to vector<8xf32>
    %27 = vector.shape_cast %26 : vector<8xf32> to vector<8x1xf32>
    %28 = vector.broadcast %27 : vector<8x1xf32> to vector<8x8xf32>
    %29 = arith.divf %25, %28 : vector<8x8xf32>
    %30 = arith.truncf %29 : vector<8x8xf32> to vector<8x8xbf16>
    %c0_13 = arith.constant 0 : index
    %c0_14 = arith.constant 0 : index
    %c0_15 = arith.constant 0 : index
    %c0_16 = arith.constant 0 : index
    %31 = vector.load %arg12[%c0_13, %c0_14, %c0_15, %c0_16] : memref<1x4x8x8xbf16, #tpu.memory_space<vmem>>, vector<1x1x8x8xbf16>
    %32 = vector.shape_cast %31 : vector<1x1x8x8xbf16> to vector<8x8xbf16>
    %33 = vector.shape_cast %30 : vector<8x8xbf16> to vector<1x1x8x8xbf16>
    tpu.vector_store %arg12[%c0_13, %c0_14, %c0_15, %c0_16], %33 {strides = array<i32>} : memref<1x4x8x8xbf16, #tpu.memory_space<vmem>>, vector<1x1x8x8xbf16>,
    %34 = arith.truncf %29 : vector<8x8xf32> to vector<8x8xbf16>
    %cst_17 = arith.constant dense<0.000000e+00> : vector<8x8xf32>
    %35 = tpu.matmul %34, %17, %cst_17 {dimension_numbers = #tpu.dot_dimension_numbers<[1], [1], [0], [0], [0, 0, 1, 0], [], []>} : vector<8x8xbf16>, vector<8x8xbf16>, vector<8x8xf32> -> vector<8x8xf32>
    %36 = arith.truncf %35 : vector<8x8xf32> to vector<8x8xbf16>
    %c0_18 = arith.constant 0 : index
    %c0_19 = arith.constant 0 : index
    %37 = vector.load %arg14[%c0_18, %c0_19] : memref<8x32xbf16, #tpu.memory_space<vmem>>, vector<8x8xbf16>
    tpu.vector_store %arg14[%c0_18, %c0_19], %36 {strides = array<i32>} : memref<8x32xbf16, #tpu.memory_space<vmem>>, vector<8x8xbf16>,
    %38 = vector.extract_strided_slice %14 {offsets = [0, 8], sizes = [8, 8], strides = [1, 1]} : vector<8x32xbf16> to vector<8x8xbf16>
    %c8 = arith.constant 8 : index
    %c0_20 = arith.constant 0 : index
    %39 = vector.load %arg13[%c8, %c0_20] : memref<64x8xbf16, #tpu.memory_space<vmem>>, vector<8x8xbf16>
    %c40 = arith.constant 40 : index
    %c0_21 = arith.constant 0 : index
    %40 = vector.load %arg13[%c40, %c0_21] : memref<64x8xbf16, #tpu.memory_space<vmem>>, vector<8x8xbf16>
    %cst_22 = arith.constant dense<0.000000e+00> : vector<8x8xf32>
    %41 = tpu.matmul %38, %39, %cst_22 {dimension_numbers = #tpu.dot_dimension_numbers<[1], [0], [0], [1], [0, 0, 1, 1], [], []>} : vector<8x8xbf16>, vector<8x8xbf16>, vector<8x8xf32> -> vector<8x8xf32>
    %cst_23 = arith.constant 0.353553385 : f32
    %42 = vector.broadcast %cst_23 : f32 to vector<8x8xf32>
    %43 = arith.mulf %41, %42 : vector<8x8xf32>
    %cst_24 = arith.constant dense<0xFF800000> : vector<8xf32>
    %44 = vector.multi_reduction <maximumf>, %43, %cst_24 [1] : vector<8x8xf32> to vector<8xf32>
    %45 = vector.shape_cast %44 : vector<8xf32> to vector<8x1xf32>
    %46 = vector.broadcast %45 : vector<8x1xf32> to vector<8x8xf32>
    %47 = arith.subf %43, %46 : vector<8x8xf32>
    %48 = math.exp %47 : vector<8x8xf32>
    %cst_25 = arith.constant dense<0.000000e+00> : vector<8xf32>
    %49 = vector.multi_reduction <add>, %48, %cst_25 [1] : vector<8x8xf32> to vector<8xf32>
    %50 = vector.shape_cast %49 : vector<8xf32> to vector<8x1xf32>
    %51 = vector.broadcast %50 : vector<8x1xf32> to vector<8x8xf32>
    %52 = arith.divf %48, %51 : vector<8x8xf32>
    %53 = arith.truncf %52 : vector<8x8xf32> to vector<8x8xbf16>
    %c0_26 = arith.constant 0 : index
    %c1 = arith.constant 1 : index
    %c0_27 = arith.constant 0 : index
    %c0_28 = arith.constant 0 : index
    %54 = vector.load %arg12[%c0_26, %c1, %c0_27, %c0_28] : memref<1x4x8x8xbf16, #tpu.memory_space<vmem>>, vector<1x1x8x8xbf16>
    %55 = vector.shape_cast %54 : vector<1x1x8x8xbf16> to vector<8x8xbf16>
    %56 = vector.shape_cast %53 : vector<8x8xbf16> to vector<1x1x8x8xbf16>
    tpu.vector_store %arg12[%c0_26, %c1, %c0_27, %c0_28], %56 {strides = array<i32>} : memref<1x4x8x8xbf16, #tpu.memory_space<vmem>>, vector<1x1x8x8xbf16>,
    %57 = arith.truncf %52 : vector<8x8xf32> to vector<8x8xbf16>
    %cst_29 = arith.constant dense<0.000000e+00> : vector<8x8xf32>
    %58 = tpu.matmul %57, %40, %cst_29 {dimension_numbers = #tpu.dot_dimension_numbers<[1], [1], [0], [0], [0, 0, 1, 0], [], []>} : vector<8x8xbf16>, vector<8x8xbf16>, vector<8x8xf32> -> vector<8x8xf32>
    %59 = arith.truncf %58 : vector<8x8xf32> to vector<8x8xbf16>
    %c0_30 = arith.constant 0 : index
    %c8_31 = arith.constant 8 : index
    %60 = vector.load %arg14[%c0_30, %c8_31] : memref<8x32xbf16, #tpu.memory_space<vmem>>, vector<8x8xbf16>
    tpu.vector_store %arg14[%c0_30, %c8_31], %59 {strides = array<i32>} : memref<8x32xbf16, #tpu.memory_space<vmem>>, vector<8x8xbf16>,
    %61 = vector.extract_strided_slice %14 {offsets = [0, 16], sizes = [8, 8], strides = [1, 1]} : vector<8x32xbf16> to vector<8x8xbf16>
    %c16 = arith.constant 16 : index
    %c0_32 = arith.constant 0 : index
    %62 = vector.load %arg13[%c16, %c0_32] : memref<64x8xbf16, #tpu.memory_space<vmem>>, vector<8x8xbf16>
    %c48 = arith.constant 48 : index
    %c0_33 = arith.constant 0 : index
    %63 = vector.load %arg13[%c48, %c0_33] : memref<64x8xbf16, #tpu.memory_space<vmem>>, vector<8x8xbf16>
    %cst_34 = arith.constant dense<0.000000e+00> : vector<8x8xf32>
    %64 = tpu.matmul %61, %62, %cst_34 {dimension_numbers = #tpu.dot_dimension_numbers<[1], [0], [0], [1], [0, 0, 1, 1], [], []>} : vector<8x8xbf16>, vector<8x8xbf16>, vector<8x8xf32> -> vector<8x8xf32>
    %cst_35 = arith.constant 0.353553385 : f32
    %65 = vector.broadcast %cst_35 : f32 to vector<8x8xf32>
    %66 = arith.mulf %64, %65 : vector<8x8xf32>
    %cst_36 = arith.constant dense<0xFF800000> : vector<8xf32>
    %67 = vector.multi_reduction <maximumf>, %66, %cst_36 [1] : vector<8x8xf32> to vector<8xf32>
    %68 = vector.shape_cast %67 : vector<8xf32> to vector<8x1xf32>
    %69 = vector.broadcast %68 : vector<8x1xf32> to vector<8x8xf32>
    %70 = arith.subf %66, %69 : vector<8x8xf32>
    %71 = math.exp %70 : vector<8x8xf32>
    %cst_37 = arith.constant dense<0.000000e+00> : vector<8xf32>
    %72 = vector.multi_reduction <add>, %71, %cst_37 [1] : vector<8x8xf32> to vector<8xf32>
    %73 = vector.shape_cast %72 : vector<8xf32> to vector<8x1xf32>
    %74 = vector.broadcast %73 : vector<8x1xf32> to vector<8x8xf32>
    %75 = arith.divf %71, %74 : vector<8x8xf32>
    %76 = arith.truncf %75 : vector<8x8xf32> to vector<8x8xbf16>
    %c0_38 = arith.constant 0 : index
    %c2 = arith.constant 2 : index
    %c0_39 = arith.constant 0 : index
    %c0_40 = arith.constant 0 : index
    %77 = vector.load %arg12[%c0_38, %c2, %c0_39, %c0_40] : memref<1x4x8x8xbf16, #tpu.memory_space<vmem>>, vector<1x1x8x8xbf16>
    %78 = vector.shape_cast %77 : vector<1x1x8x8xbf16> to vector<8x8xbf16>
    %79 = vector.shape_cast %76 : vector<8x8xbf16> to vector<1x1x8x8xbf16>
    tpu.vector_store %arg12[%c0_38, %c2, %c0_39, %c0_40], %79 {strides = array<i32>} : memref<1x4x8x8xbf16, #tpu.memory_space<vmem>>, vector<1x1x8x8xbf16>,
    %80 = arith.truncf %75 : vector<8x8xf32> to vector<8x8xbf16>
    %cst_41 = arith.constant dense<0.000000e+00> : vector<8x8xf32>
    %81 = tpu.matmul %80, %63, %cst_41 {dimension_numbers = #tpu.dot_dimension_numbers<[1], [1], [0], [0], [0, 0, 1, 0], [], []>} : vector<8x8xbf16>, vector<8x8xbf16>, vector<8x8xf32> -> vector<8x8xf32>
    %82 = arith.truncf %81 : vector<8x8xf32> to vector<8x8xbf16>
    %c0_42 = arith.constant 0 : index
    %c16_43 = arith.constant 16 : index
    %83 = vector.load %arg14[%c0_42, %c16_43] : memref<8x32xbf16, #tpu.memory_space<vmem>>, vector<8x8xbf16>
    tpu.vector_store %arg14[%c0_42, %c16_43], %82 {strides = array<i32>} : memref<8x32xbf16, #tpu.memory_space<vmem>>, vector<8x8xbf16>,
    %84 = vector.extract_strided_slice %14 {offsets = [0, 24], sizes = [8, 8], strides = [1, 1]} : vector<8x32xbf16> to vector<8x8xbf16>
    %c24 = arith.constant 24 : index
    %c0_44 = arith.constant 0 : index
    %85 = vector.load %arg13[%c24, %c0_44] : memref<64x8xbf16, #tpu.memory_space<vmem>>, vector<8x8xbf16>
    %c56 = arith.constant 56 : index
    %c0_45 = arith.constant 0 : index
    %86 = vector.load %arg13[%c56, %c0_45] : memref<64x8xbf16, #tpu.memory_space<vmem>>, vector<8x8xbf16>
    %cst_46 = arith.constant dense<0.000000e+00> : vector<8x8xf32>
    %87 = tpu.matmul %84, %85, %cst_46 {dimension_numbers = #tpu.dot_dimension_numbers<[1], [0], [0], [1], [0, 0, 1, 1], [], []>} : vector<8x8xbf16>, vector<8x8xbf16>, vector<8x8xf32> -> vector<8x8xf32>
    %cst_47 = arith.constant 0.353553385 : f32
    %88 = vector.broadcast %cst_47 : f32 to vector<8x8xf32>
    %89 = arith.mulf %87, %88 : vector<8x8xf32>
    %cst_48 = arith.constant dense<0xFF800000> : vector<8xf32>
    %90 = vector.multi_reduction <maximumf>, %89, %cst_48 [1] : vector<8x8xf32> to vector<8xf32>
    %91 = vector.shape_cast %90 : vector<8xf32> to vector<8x1xf32>
    %92 = vector.broadcast %91 : vector<8x1xf32> to vector<8x8xf32>
    %93 = arith.subf %89, %92 : vector<8x8xf32>
    %94 = math.exp %93 : vector<8x8xf32>
    %cst_49 = arith.constant dense<0.000000e+00> : vector<8xf32>
    %95 = vector.multi_reduction <add>, %94, %cst_49 [1] : vector<8x8xf32> to vector<8xf32>
    %96 = vector.shape_cast %95 : vector<8xf32> to vector<8x1xf32>
    %97 = vector.broadcast %96 : vector<8x1xf32> to vector<8x8xf32>
    %98 = arith.divf %94, %97 : vector<8x8xf32>
    %99 = arith.truncf %98 : vector<8x8xf32> to vector<8x8xbf16>
    %c0_50 = arith.constant 0 : index
    %c3 = arith.constant 3 : index
    %c0_51 = arith.constant 0 : index
    %c0_52 = arith.constant 0 : index
    %100 = vector.load %arg12[%c0_50, %c3, %c0_51, %c0_52] : memref<1x4x8x8xbf16, #tpu.memory_space<vmem>>, vector<1x1x8x8xbf16>
    %101 = vector.shape_cast %100 : vector<1x1x8x8xbf16> to vector<8x8xbf16>
    %102 = vector.shape_cast %99 : vector<8x8xbf16> to vector<1x1x8x8xbf16>
    tpu.vector_store %arg12[%c0_50, %c3, %c0_51, %c0_52], %102 {strides = array<i32>} : memref<1x4x8x8xbf16, #tpu.memory_space<vmem>>, vector<1x1x8x8xbf16>,
    %103 = arith.truncf %98 : vector<8x8xf32> to vector<8x8xbf16>
    %cst_53 = arith.constant dense<0.000000e+00> : vector<8x8xf32>
    %104 = tpu.matmul %103, %86, %cst_53 {dimension_numbers = #tpu.dot_dimension_numbers<[1], [1], [0], [0], [0, 0, 1, 0], [], []>} : vector<8x8xbf16>, vector<8x8xbf16>, vector<8x8xf32> -> vector<8x8xf32>
    %105 = arith.truncf %104 : vector<8x8xf32> to vector<8x8xbf16>
    %c0_54 = arith.constant 0 : index
    %c24_55 = arith.constant 24 : index
    %106 = vector.load %arg14[%c0_54, %c24_55] : memref<8x32xbf16, #tpu.memory_space<vmem>>, vector<8x8xbf16>
    tpu.vector_store %arg14[%c0_54, %c24_55], %105 {strides = array<i32>} : memref<8x32xbf16, #tpu.memory_space<vmem>>, vector<8x8xbf16>,
    %c0_56 = arith.constant 0 : index
    %c0_57 = arith.constant 0 : index
    %107 = vector.load %arg14[%c0_56, %c0_57] : memref<8x32xbf16, #tpu.memory_space<vmem>>, vector<8x32xbf16>
    %c0_58 = arith.constant 0 : index
    %c0_59 = arith.constant 0 : index
    %108 = vector.load %arg7[%c0_58, %c0_59] : memref<32x32xbf16, #tpu.memory_space<vmem>>, vector<32x32xbf16>
    %cst_60 = arith.constant dense<0.000000e+00> : vector<8x32xf32>
    %109 = tpu.matmul %107, %108, %cst_60 {dimension_numbers = #tpu.dot_dimension_numbers<[1], [0], [0], [1], [0, 0, 1, 1], [], []>} : vector<8x32xbf16>, vector<32x32xbf16>, vector<8x32xf32> -> vector<8x32xf32>
    %c0_61 = arith.constant 0 : index
    %c0_62 = arith.constant 0 : index
    %110 = vector.load %arg8[%c0_61, %c0_62] : memref<1x32xf32, #tpu.memory_space<vmem>>, vector<1x32xf32>
    %111 = vector.broadcast %110 : vector<1x32xf32> to vector<8x32xf32>
    %112 = arith.addf %109, %111 : vector<8x32xf32>
    %113 = arith.addf %112, %7 : vector<8x32xf32>
    %cst_63 = arith.constant dense<0.000000e+00> : vector<8xf32>
    %114 = vector.multi_reduction <add>, %113, %cst_63 [1] : vector<8x32xf32> to vector<8xf32>
    %115 = vector.shape_cast %114 : vector<8xf32> to vector<8x1xf32>
    %cst_64 = arith.constant 3.200000e+01 : f32
    %116 = vector.broadcast %cst_64 : f32 to vector<8x1xf32>
    %117 = arith.divf %115, %116 : vector<8x1xf32>
    %118 = vector.broadcast %117 : vector<8x1xf32> to vector<8x32xf32>
    %119 = arith.subf %113, %118 : vector<8x32xf32>
    %120 = arith.mulf %119, %119 : vector<8x32xf32>
    %cst_65 = arith.constant dense<0.000000e+00> : vector<8xf32>
    %121 = vector.multi_reduction <add>, %120, %cst_65 [1] : vector<8x32xf32> to vector<8xf32>
    %122 = vector.shape_cast %121 : vector<8xf32> to vector<8x1xf32>
    %cst_66 = arith.constant 3.200000e+01 : f32
    %123 = vector.broadcast %cst_66 : f32 to vector<8x1xf32>
    %124 = arith.divf %122, %123 : vector<8x1xf32>
    %cst_67 = arith.constant 9.99999996E-13 : f32
    %125 = vector.broadcast %cst_67 : f32 to vector<8x1xf32>
    %126 = arith.addf %124, %125 : vector<8x1xf32>
    %127 = math.rsqrt %126 : vector<8x1xf32>
    %128 = vector.broadcast %127 : vector<8x1xf32> to vector<8x32xf32>
    %129 = arith.mulf %119, %128 : vector<8x32xf32>
    %c0_68 = arith.constant 0 : index
    %c0_69 = arith.constant 0 : index
    %130 = vector.load %arg9[%c0_68, %c0_69] : memref<1x32xf32, #tpu.memory_space<vmem>>, vector<1x32xf32>
    %131 = vector.broadcast %130 : vector<1x32xf32> to vector<8x32xf32>
    %132 = arith.mulf %129, %131 : vector<8x32xf32>
    %c0_70 = arith.constant 0 : index
    %c0_71 = arith.constant 0 : index
    %133 = vector.load %arg10[%c0_70, %c0_71] : memref<1x32xf32, #tpu.memory_space<vmem>>, vector<1x32xf32>
    %134 = vector.broadcast %133 : vector<1x32xf32> to vector<8x32xf32>
    %135 = arith.addf %132, %134 : vector<8x32xf32>
    %c0_72 = arith.constant 0 : index
    %c0_73 = arith.constant 0 : index
    %c0_74 = arith.constant 0 : index
    %136 = vector.load %arg11[%c0_72, %c0_73, %c0_74] : memref<1x8x32xf32, #tpu.memory_space<vmem>>, vector<1x8x32xf32>
    %137 = vector.shape_cast %136 : vector<1x8x32xf32> to vector<8x32xf32>
    %138 = vector.shape_cast %135 : vector<8x32xf32> to vector<1x8x32xf32>
    tpu.vector_store %arg11[%c0_72, %c0_73, %c0_74], %138 {strides = array<i32>} : memref<1x8x32xf32, #tpu.memory_space<vmem>>, vector<1x8x32xf32>,
    return
  }
  func.func @transform_0(%arg0: i32, %arg1: i32) -> (i32, i32, i32) {
    %c0_i32 = arith.constant 0 : i32
    %c0_i32_0 = arith.constant 0 : i32
    %c0_i32_1 = arith.constant 0 : i32
    return %arg0, %c0_i32, %c0_i32_0 : i32, i32, i32
  }
  func.func @transform_1(%arg0: i32, %arg1: i32) -> (i32, i32) {
    %c0_i32 = arith.constant 0 : i32
    %c0_i32_0 = arith.constant 0 : i32
    %c0_i32_1 = arith.constant 0 : i32
    return %c0_i32, %c0_i32_0 : i32, i32
  }
  func.func @transform_2(%arg0: i32, %arg1: i32) -> (i32, i32) {
    %c0_i32 = arith.constant 0 : i32
    %c0_i32_0 = arith.constant 0 : i32
    %c0_i32_1 = arith.constant 0 : i32
    return %c0_i32, %c0_i32_0 : i32, i32
  }
  func.func @transform_3(%arg0: i32, %arg1: i32) -> (i32, i32) {
    %c0_i32 = arith.constant 0 : i32
    %c0_i32_0 = arith.constant 0 : i32
    %c0_i32_1 = arith.constant 0 : i32
    return %c0_i32, %c0_i32_0 : i32, i32
  }
  func.func @transform_4(%arg0: i32, %arg1: i32) -> (i32, i32) {
    %c0_i32 = arith.constant 0 : i32
    %c0_i32_0 = arith.constant 0 : i32
    %c0_i32_1 = arith.constant 0 : i32
    return %c0_i32, %c0_i32_0 : i32, i32
  }
  func.func @transform_5(%arg0: i32, %arg1: i32) -> (i32, i32) {
    %c0_i32 = arith.constant 0 : i32
    %c0_i32_0 = arith.constant 0 : i32
    %c0_i32_1 = arith.constant 0 : i32
    return %c0_i32, %c0_i32_0 : i32, i32
  }
  func.func @transform_6(%arg0: i32, %arg1: i32) -> (i32, i32) {
    %c0_i32 = arith.constant 0 : i32
    %c0_i32_0 = arith.constant 0 : i32
    %c0_i32_1 = arith.constant 0 : i32
    return %c0_i32, %c0_i32_0 : i32, i32
  }
  func.func @transform_7(%arg0: i32, %arg1: i32) -> (i32, i32) {
    %c0_i32 = arith.constant 0 : i32
    %c0_i32_0 = arith.constant 0 : i32
    %c0_i32_1 = arith.constant 0 : i32
    return %c0_i32, %c0_i32_0 : i32, i32
  }
  func.func @transform_8(%arg0: i32, %arg1: i32) -> (i32, i32) {
    %c0_i32 = arith.constant 0 : i32
    %c0_i32_0 = arith.constant 0 : i32
    %c0_i32_1 = arith.constant 0 : i32
    return %c0_i32, %c0_i32_0 : i32, i32
  }
  func.func @transform_9(%arg0: i32, %arg1: i32) -> (i32, i32, i32) {
    %c0_i32 = arith.constant 0 : i32
    %c0_i32_0 = arith.constant 0 : i32
    return %arg0, %arg1, %c0_i32 : i32, i32, i32
  }
  func.func @transform_10(%arg0: i32, %arg1: i32) -> (i32, i32, i32, i32) {
    %c0_i32 = arith.constant 0 : i32
    %c0_i32_0 = arith.constant 0 : i32
    %c0_i32_1 = arith.constant 0 : i32
    return %arg0, %c0_i32, %arg1, %c0_i32_0 : i32, i32, i32, i32
  }
}

</mosaic_0001>

<bundles_post_ra>
// kernel: tpu_custom_call.1
= control target key start
LH: loop header
LB: loop body
LE: loop exit
PB: predicated region body
PF: predicated region fallthrough
CT: control target
= control target key end

     0   :  { %s1687_s0 = inlined_call_operand.vmem [shape: f32[2,8,32], index: 0, kind: input, shape index: {}]   ;;  %s1688_s1 = inlined_call_operand.vmem [shape: bf16[32,32], index: 1, kind: input, shape index: {}]   ;;  %s1689_s2 = inlined_call_operand.vmem [shape: f32[1,32], index: 2, kind: input, shape index: {}]   ;;  %s1690_s3 = inlined_call_operand.vmem [shape: bf16[64,32], index: 3, kind: input, shape index: {}]   ;;  %s1691_s4 = inlined_call_operand.vmem [shape: f32[64,1], index: 4, kind: input, shape index: {}]   ;;  %s1692_s5 = inlined_call_operand.vmem [shape: bf16[32,32], index: 5, kind: input, shape index: {}]   ;;  %s1693_s6 = inlined_call_operand.vmem [shape: f32[1,32], index: 6, kind: input, shape index: {}]   ;;  %s1694_s7 = inlined_call_operand.vmem [shape: f32[1,32], index: 7, kind: input, shape index: {}]   ;;  %s1695_s8 = inlined_call_operand.vmem [shape: f32[1,32], index: 8, kind: input, shape index: {}]   ;;  %s1696_s9 = inlined_call_operand.hbm [shape: f32[2,8,32], index: 9, kind: output, shape index: {0}]   ;;  %s1697_s10 = inlined_call_operand.hbm [shape: bf16[2,4,8,8], index: 10, kind: output, shape index: {1}]  }
   0x1   :  { %1698 = sst [smem:[#allocation10_spill]] %s1687_s0 }
   0x2   :  { %1699 = sst [smem:[#allocation11_spill]] %s1688_s1 }
   0x3   :  { %1700 = sst [smem:[#allocation12_spill]] %s1689_s2 }
   0x4   :  { %1701 = sst [smem:[#allocation13_spill]] %s1690_s3 }
   0x5   :  { %1702 = sst [smem:[#allocation14_spill]] %s1691_s4 }
   0x6   :  { %1703 = sst [smem:[#allocation15_spill]] %s1692_s5 }
   0x7   :  { %16 = vsyncpa [#allocation5], 0 }
   0x8   :  { %18 = vsyncpa [#allocation5 + $0x1], 0 }
   0x9   :  { %19 = vsyncpa [#allocation7], 0 }
   0xa   :  { %21 = vsyncpa [#allocation7 + $0x1], 0  ;;  %s1445_s13 = smov 0   ;;  %s1447_s14 = smov 0  }
   0xb   :  { %s1449_s15 = smov 0   ;;  %s1451_s16 = smov 0  }
   0xc   :  { %s1453_s17 = smov 0   ;;  %s1455_s18 = smov 0  }
   0xd LB: > { %s1098_s19 = sadd.s32 4294967295, %s1378_s18   ;;  %s1099_s20 = sadd.s32 4294967294, %s1378_s18   ;;  %s1378_s18 = sphi %s1455_s18, %s27_s18   ;;  %s1374_s17 = sphi %s1453_s17, %s1716_s17   ;;  %s1370_s16 = sphi %s1451_s16, %s1715_s16   ;;  %s1366_s15 = sphi %s1449_s15, %s1714_s15   ;;  %s1362_s14 = sphi %s1447_s14, %s1713_s14   ;;  %s1358_s13 = sphi %s1445_s13, %s1712_s13  }
   0xe   : > { %s39_s21 = sadd.s32 1, %s1374_s17  ;;  %s242_s22 = sadd.s32 1, %s1366_s15 }
   0xf   : > { %p41_p0 = scmp.ge.s32.totalorder %s39_s21, 2  ;;  %p252_p1 = scmp.ne.s32.totalorder %s1366_s15, %s1362_s14 }
  0x10   : > { %p253_p2 = scmp.eq.s32.totalorder %s1098_s19, 1  ;;  %p258_p3 = scmp.ne.s32.totalorder %s1362_s14, %s1358_s13 }
  0x11   : > { %s1718_s21 = smov (%p41_p0, %s39_s21), 0  ;;  %p259_p5 = scmp.eq.s32.totalorder %s1099_s20, 1 }
  0x12   : > { %p1485_p4 = por %p253_p2, %p252_p1  ;;  %s237_s24 = ssub.s32 %s1374_s17, %s1718_s21 }
  0x13   : > { %p1102_p6 = scmp.ge.s32.totalorder %s1378_s18, 1  ;;  %p240_p7 = scmp.eq.s32.totalorder %s237_s24, 0 }
  0x14   : > { %p1492_p8 = por %p259_p5, %p258_p3  ;;  %p336_p9 = scmp.lt.s32.totalorder %s1378_s18, 3 }
  0x15   : > { %s1498_s26 = scalar_select %p240_p7, %s1366_s15, %s242_s22  }
  0x16   : > { %p337_p10 = pnand %p1102_p6, %p336_p9 }
  0x17   : > { %s1706_s1 = sld [smem:[#allocation11_spill]] (!%p337_p10)  ;;  %p378_p11 = scmp.lt.s32.totalorder (!%p337_p10), %s1370_s16, 1 }
  0x18   : > { %340 = sbr.rel (%p337_p10) target bundleno = 1785 (0x6f9), region = 56  ;;  %s1707_s4 = sld [smem:[#allocation14_spill]] (!%p337_p10) }
  0x19   : > { %s1708_s0 = sld [smem:[#allocation10_spill]] (!%p337_p10)  ;;  %s1382_s22 = smov (!%p337_p10), 120  }
  0x1a   : > { %s1709_s3 = sld [smem:[#allocation13_spill]] (!%p337_p10)  ;;  %s1383_s24 = smov (!%p337_p10), 104  }
  0x1b   : > { %s1710_s2 = sld [smem:[#allocation12_spill]] (!%p337_p10)  ;;  %s1569_s29 = sand.u32 (!%p337_p10), 1, %s1362_s14  }
  0x1c   : > { %s1104_s30 = sshll.u32 (!%p337_p10), %s1569_s29, 4  ;;  %s1384_s28 = smov (!%p337_p10), 8  }
  0x1d   : > { %v1167_v0 = vld [vmem:[%s1706_s1 + $0x8] sm:$0xff]  ;;  %v1380_v1 = vmov 0   ;;  %v1166_v3 = vld [vmem:[%s1706_s1] sm:$0xff]  ;;  %s379_s19 = scalar_select %p378_p11, %s1370_s16, 1  ;;  %vm465_vm0 = vcmask 261120   ;;  %vm518_vm1 = vcmask 60416  }
  0x1e   : > { %1241 = vset.pattern.permute.xlu0 %v1380_v1  ;;  %v397_v2 = vld [vmem:[%s1707_s4] sm:$0xff]  ;;  %1242 = vset.pattern.permute.xlu2 %v1380_v1  ;;  %v398_v6 = vld [vmem:[%s1707_s4 + $0x8] sm:$0xff]  ;;  %v400_v12 = vld [vmem:[%s1707_s4 + $0x18] sm:$0xff]  ;;  %vm575_vm2 = vcmask 1043456   ;;  %vm571_vm3 = vcmask 64512   ;;  %s1573_s11 = scalar_lea.vmem [#allocation6], %s1104_s30 }
  0x1f   : > { %561 = vmatpush.bf16.msra.mxu1 %v1167_v0  ;;  %407 = vperm.xlu0 %1241, %v397_v2   ;;  %s1105_s20 = sshll.u32 %s379_s19, 3  ;;  %v401_v9 = vld [vmem:[%s1707_s4 + $0x20] sm:$0xff]  ;;  %v402_v10 = vld [vmem:[%s1707_s4 + $0x28] sm:$0xff]  ;;  %s1385_s30 = smov 24  }
  0x20   : > { %1243 = vset.pattern.permute.xlu1 %v1380_v1  ;;  %s381_s27 = scalar_lea.vmem %s1708_s0, %s1105_s20  ;;  %v1162_v8 = vld [vmem:[%s1709_s3] sm:$0xff]  ;;  %v1163_v11 = vld [vmem:[%s1709_s3 + $0x8] sm:$0xff]  ;;  %v1164_v13 = vld [vmem:[%s1709_s3 + $0x10] sm:$0xff]  ;;  %s1381_s20 = smov 112  }
  0x21   : > { %v1514_v4 = vld [vmem:[%s381_s27] sm:$0xff]  ;;  %s1386_s12 = smov 16   ;;  %s1711_s5 = sld [smem:[#allocation15_spill]] }
  0x22   : > { %v388_v5 = vpack.c.bf16 %v1514_v4, %v1514_v4  ;;  %v1244_v15 = vld [vmem:[%s1710_s2] ss:$0 sm:$0xff]  ;;  %s959_s27 = scalar_lea.sflag [#allocation7], %s1569_s29 }
  0x23   : > { %562 = vmatpush.bf16.msra.mxu1 %v1166_v3 }
  0x24   : > { %v479_v7 = vsel %vm465_vm0, %v388_v5, 0 }
  0x25   : > { %488 = vmatpush.bf16.xpose.msra.mxu0 %v479_v7 }
  0x26   : > { %1134 = vmatmul.msk.bf16.vlgmr.msra.gmra.mxu1 %vm465_vm0, %v388_v5 }
  0x27   : > { %412 = vperm.xlu0 %1241, %v398_v6  }
  0x2c   : > { %1122 = vmatmul.msk.bf16.vlgmr.msra.gmra.mxu0 %vm465_vm0, %v1162_v8 }
  0x2f   : > { %427 = vperm.xlu0 %1241, %v401_v9   ;;  %v399_v9 = vld [vmem:[%s1707_s4 + $0x10] sm:$0xff] }
  0x37   : > { %432 = vperm.xlu0 %1241, %v402_v10  }
  0x3c   : > { %1123 = vmatmul.msk.bf16.gmra.mxu0 %vm465_vm0, %v1163_v11 }
  0x3f   : > { %422 = vperm.xlu0 %1241, %v400_v12  }
  0x4c   : > { %1124 = vmatmul.msk.bf16.gmra.mxu0 %vm465_vm0, %v1164_v13 }
  0x91   : > { %v408_v14 = vpop.permute.xlu0 %407 }
  0x99   : > { %v413_v17 = vpop.permute.xlu0 %412 }
  0xa1   : > { %v428_v25 = vpop.permute.xlu0 %427 }
  0xa3   : > { %v564_v16 = vpop.f32.mrf.mxu1 }
  0xa4   : > { %v565_v18 = vadd.f32 %v1244_v15, %v564_v16 }
  0xa6   : > { %v568_v19 = vpack.c.bf16 %v565_v18, %v565_v18 }
  0xa8   : > { %v644_v20 = vunpack.c.l.b16 %v568_v19 }
  0xa9   : > { %v490_v22 = vpop.f32.mrf.mxu0  ;;  %v433_v31 = vpop.permute.xlu0 %432 }
  0xaa   : > { %v645_v21 = vpack.c.b16 %v644_v20, %v644_v20  ;;  %v491_v24 = vadd.f32 %v490_v22, %v408_v14 }
  0xab   : > { %v566_v23 = vpop.f32.mrf.mxu1 }
  0xac   : > { %723 = vrot.lane.b32.xlu0 %v645_v21, %s1381_s20  ;;  %646 = vrot.lane.b32.xlu1 %v645_v21, %s1382_s22  ;;  %v510_v26 = vpack.c.bf16 %v491_v24, %v491_v24  ;;  %s987_s22 = sshll.u32 %s1573_s11, 4  ;;  %s988_s22 = int_to_ptr.vmem [resolvable:$true] %s987_s22 }
  0xae   : > { %519 = vst.msk [vmem:[#allocation2] sm:$0xf] %vm518_vm1, %v510_v26 }
  0xb1   : > { %v492_v27 = vpop.f32.mrf.mxu0  ;;  %v423_v34 = vpop.permute.xlu0 %422 }
  0xb2   : > { %v493_v28 = vadd.f32 %v492_v27, %v413_v17 }
  0xb4   : > { %800 = vrot.lane.b32.xlu0 %v645_v21, %s1383_s24  ;;  %v511_v29 = vpack.c.bf16 %v493_v28, %v493_v28 }
  0xb5   : > { %v569_v30 = vld [vmem:[#allocation2] sm:$0xf] }
  0xb6   : > { %v577_v32 = vsel %vm575_vm2, %v569_v30, 0  ;;  %520 = vst.msk [vmem:[#allocation2 + $0x4] sm:$0xf] %vm518_vm1, %v511_v29 }
  0xb7   : > { %586 = vmatpush.bf16.msra.mxu2 %v577_v32 }
  0xb9   : > { %v1550_v33 = vpop.f32.mrf.mxu0 }
  0xba   : > { %1135 = vmatmul.msk.bf16.vlgmr.msra.gmra.mxu2 %vm571_vm3, %v568_v19 }
  0xbd   : > { %v641_v35 = vld [vmem:[#allocation2 + $0x4] sm:$0xf] }
  0xbe   : > { %v652_v36 = vsel %vm575_vm2, %v641_v35, 0 }
  0xbf   : > { %661 = vmatpush.bf16.msrb.mxu2 %v652_v36 }
  0xc1   : > { %v497_v37 = vpop.f32.mrf.mxu0 }
  0xc2   : > { %v498_v38 = vadd.f32 %v497_v37, %v423_v34 }
  0xc4   : > { %v513_v39 = vpack.c.bf16 %v498_v38, %v498_v38 }
  0xc6   : > { %522 = vst.msk [vmem:[#allocation2 + $0xc] sm:$0xf] %vm518_vm1, %v513_v39 }
  0xc9   : > { %v500_v40 = vpop.f32.mrf.mxu0 }
  0xca   : > { %v501_v41 = vadd.f32 %v500_v40, %v428_v25 }
  0xcc   : > { %v514_v42 = vpack.c.bf16 %v501_v41, %v501_v41 }
  0xcd   : > { %v798_v48 = vld [vmem:[#allocation2 + $0xc] sm:$0xf] }
  0xce   : > { %523 = vst.msk [vmem:[#allocation2 + $0x10] sm:$0xf] %vm518_vm1, %v514_v42  ;;  %v806_v50 = vsel %vm575_vm2, %v798_v48, 0 }
  0xd1   : > { %v502_v43 = vpop.f32.mrf.mxu0 }
  0xd2   : > { %v503_v44 = vadd.f32 %v502_v43, %v433_v31 }
  0xd4   : > { %v515_v45 = vpack.c.bf16 %v503_v44, %v503_v44 }
  0xd5   : > { %v570_v46 = vld [vmem:[#allocation2 + $0x10] sm:$0xf] }
  0xd6   : > { %524 = vst.msk [vmem:[#allocation2 + $0x14] sm:$0xf] %vm518_vm1, %v515_v45  ;;  %v624_v47 = vsel %vm571_vm3, %v570_v46, 0  ;;  %v1165_v45 = vld [vmem:[%s1709_s3 + $0x18] sm:$0xff]  ;;  %s1288_s3 = scalar_lea.hbm %s1697_s10, 32 }
  0xd7   : > { %633 = vmatpush.bf16.xpose.msra.mxu3 %v624_v47  ;;  %1125 = vmatmul.msk.bf16.gmra.mxu0 %vm465_vm0, %v1165_v45 }
  0xdd   : > { %v642_v49 = vld [vmem:[#allocation2 + $0x14] sm:$0xf] }
  0xde   : > { %v699_v51 = vsel %vm571_vm3, %v642_v49, 0 }
  0xdf   : > { %708 = vmatpush.bf16.xpose.msrb.mxu1 %v699_v51 }
  0xe7   : > { %815 = vmatpush.bf16.msra.mxu1 %v806_v50 }
 0x11e   : > { %v647_v52 = vpop.permute.xlu1 %646  ;;  %v724_v40 = vpop.permute.xlu0 %723 }
 0x11f   : > { %1137 = vmatmul.msk.bf16.vlgmr.msrb.gmra.mxu2 %vm571_vm3, %v647_v52 }
 0x126   : > { %v801_v41 = vpop.permute.xlu0 %800 }
 0x13d   : > { %v588_v53 = vpop.f32.mrf.mxu2 }
 0x13e   : > { %v592_v54 = vmul.f32 0.35355338, %v588_v53 }
 0x140   : > { %v593_v55 = vsel %vm571_vm3, %v592_v54, -inf }
 0x141   : > { %594 = vmax.xlane.f32.xlu1 %v593_v55 }
 0x145   : > { %v590_v56 = vpop.f32.mrf.mxu2 }
 0x146   : > { %v404_v56 = vld [vmem:[%s1707_s4 + $0x38] sm:$0xff] }
 0x1a2   : > { %v663_v57 = vpop.f32.mrf.mxu2 }
 0x1a3   : > { %v667_v58 = vmul.f32 0.35355338, %v663_v57  ;;  %v1595_v57 = vpop.f32.mrf.mxu0 }
 0x1a5   : > { %v668_v59 = vsel %vm571_vm3, %v667_v58, -inf }
 0x1a6   : > { %669 = vmax.xlane.f32.xlu2 %v668_v59 }
 0x1aa   : > { %v665_v60 = vpop.f32.mrf.mxu2 }
 0x1b4   : > { %v595_v61 = vpop.xlane.xlu1 %594 }
 0x1b5   : > { %v596_v62 = vsub.f32 %v592_v54, %v595_v61  ;;  %v507_v61 = vpop.f32.mrf.mxu0 }
 0x1b7   : > { %v597_v63 = vmul.f32 1.442695, %v596_v62 }
 0x1b9   : > { %1248 = vpow2.f32 %v597_v63 }
 0x1bf   : > { %v1249_v0 = vpop.eup %1248 }
 0x1c0   : > { %v599_v1 = vsel %vm571_vm3, %v1249_v0, 0.0 }
 0x1c1   : > { %600 = vadd.xlane.f32.xlu2 %v599_v1 }
 0x219   : > { %v670_v2 = vpop.xlane.xlu2 %669 }
 0x21a   : > { %v671_v3 = vsub.f32 %v667_v58, %v670_v2 }
 0x21c   : > { %v672_v5 = vmul.f32 1.442695, %v671_v3 }
 0x21e   : > { %1250 = vpow2.f32 %v672_v5 }
 0x224   : > { %v1251_v6 = vpop.eup %1250 }
 0x225   : > { %v674_v7 = vsel %vm571_vm3, %v1251_v6, 0.0 }
 0x226   : > { %675 = vadd.xlane.f32.xlu2 %v674_v7 }
 0x234   : > { %v601_v8 = vpop.xlane.xlu2 %600 }
 0x235   : > { %1252 = vrcp.f32 %v601_v8  ;;  %v613_v13 = vand.u32 2147483648, %v601_v8  ;;  %v611_v15 = vand.u32 2147483647, %v601_v8  ;;  %vm607_vm5 = vweird.f32 %v601_v8 }
 0x237   : > { %v614_v17 = vor.u32 1.1754944e-38, %v613_v13  ;;  %vm612_vm7 = vcmp.eq.f32.partialorder %v611_v15, 8.507059e+37 }
 0x23b   : > { %v1253_v10 = vpop.eup %1252 }
 0x23c   : > { %v603_v11 = vmul.f32 %v1253_v10, %v601_v8  ;;  %vm608_vm4 = vweird.f32 %v1253_v10 }
 0x23d   : > { %vm609_vm6 = vmor %vm607_vm5, %vm608_vm4 }
 0x23e   : > { %417 = vperm.xlu2 %1242, %v399_v9   ;;  %v604_v12 = vsub.f32 1.0, %v603_v11  ;;  %v403_v11 = vld [vmem:[%s1707_s4 + $0x30] sm:$0xff] }
 0x240   : > { %v605_v14 = vmul.f32 %v1253_v10, %v604_v12 }
 0x242   : > { %v606_v16 = vadd.f32 %v1253_v10, %v605_v14 }
 0x244   : > { %v610_v18 = vsel %vm609_vm6, %v1253_v10, %v606_v16 }
 0x245   : > { %v615_v19 = vsel %vm612_vm7, %v614_v17, %v610_v18  ;;  %vm719_vm7 = vcmask 126016  }
 0x246   : > { %v616_v20 = vmul.f32 %v1249_v0, %v615_v19 }
 0x248   : > { %v617_v21 = vpack.c.bf16 %v616_v20, %v616_v20 }
 0x24a   : > { %1136 = vmatmul.msk.bf16.vlgmr.msra.gmra.mxu3 %vm571_vm3, %v617_v21  ;;  %619 = vst.msk [vmem:[%s1573_s11] sm:$0xf] %vm518_vm1, %v617_v21 }
 0x299   : > { %v676_v22 = vpop.xlane.xlu2 %675 }
 0x29a   : > { %1254 = vrcp.f32 %v676_v22  ;;  %v688_v28 = vand.u32 2147483648, %v676_v22  ;;  %v686_v31 = vand.u32 2147483647, %v676_v22  ;;  %vm682_vm9 = vweird.f32 %v676_v22 }
 0x29c   : > { %v689_v34 = vor.u32 1.1754944e-38, %v688_v28  ;;  %vm687_vm11 = vcmp.eq.f32.partialorder %v686_v31, 8.507059e+37 }
 0x2a0   : > { %v1255_v23 = vpop.eup %1254 }
 0x2a1   : > { %v678_v24 = vmul.f32 %v1255_v23, %v676_v22  ;;  %v418_v25 = vpop.permute.xlu2 %417  ;;  %vm683_vm8 = vweird.f32 %v1255_v23 }
 0x2a2   : > { %v496_v26 = vadd.f32 %v1550_v33, %v418_v25  ;;  %vm684_vm10 = vmor %vm682_vm9, %vm683_vm8 }
 0x2a3   : > { %v679_v27 = vsub.f32 1.0, %v678_v24 }
 0x2a4   : > { %v512_v29 = vpack.c.bf16 %v496_v26, %v496_v26 }
 0x2a5   : > { %v680_v30 = vmul.f32 %v1255_v23, %v679_v27 }
 0x2a6   : > { %521 = vst.msk [vmem:[#allocation2 + $0x8] sm:$0xf] %vm518_vm1, %v512_v29 }
 0x2a7   : > { %v681_v32 = vadd.f32 %v1255_v23, %v680_v30 }
 0x2a9   : > { %v685_v35 = vsel %vm684_vm10, %v1255_v23, %v681_v32 }
 0x2aa   : > { %v690_v36 = vsel %vm687_vm11, %v689_v34, %v685_v35 }
 0x2ab   : > { %v691_v37 = vmul.f32 %v1251_v6, %v690_v36 }
 0x2ad   : > { %v692_v38 = vpack.c.bf16 %v691_v37, %v691_v37  ;;  %v721_v39 = vld [vmem:[#allocation2 + $0x8] sm:$0xf] }
 0x2ae   : > { %v729_v33 = vsel %vm575_vm2, %v721_v39, 0 }
 0x2af   : > { %1139 = vmatmul.msk.bf16.vlgmr.msrb.gmra.mxu1 %vm571_vm3, %v692_v38  ;;  %738 = vmatpush.bf16.msrb.mxu3 %v729_v33  ;;  %1138 = vst.msk [vmem:[%s1573_s11 + $0x4] sm:$0xf] %vm518_vm1, %v692_v38 }
 0x2b2   : > { %1140 = vmatmul.msk.bf16.vlgmr.msrb.gmra.mxu3 %vm571_vm3, %v724_v40 }
 0x2bf   : > { %1143 = vmatmul.msk.bf16.vlgmr.msra.gmra.mxu1 %vm571_vm3, %v801_v41 }
 0x2cd   : > { %v635_v42 = vpop.f32.mrf.mxu3 }
 0x2ce   : > { %v639_v43 = vpack.c.bf16 %v635_v42, %v635_v42 }
 0x2d0   : > { %640 = vst.msk [vmem:[#allocation3] sm:$0xf] %vm518_vm1, %v639_v43 }
 0x2d5   : > { %v637_v44 = vpop.f32.mrf.mxu3 }
 0x32c   : > { %v710_v46 = vpop.f32.mrf.mxu1 }
 0x32d   : > { %v714_v12 = vpack.c.bf16 %v710_v46, %v710_v46 }
 0x334   : > { %v712_v47 = vpop.f32.mrf.mxu1 }
 0x335   : > { %v740_v48 = vpop.f32.mrf.mxu3 }
 0x336   : > { %v744_v49 = vmul.f32 0.35355338, %v740_v48 }
 0x338   : > { %v745_v50 = vsel %vm571_vm3, %v744_v49, -inf }
 0x339   : > { %746 = vmax.xlane.f32.xlu2 %v745_v50 }
 0x33c   : > { %v817_v51 = vpop.f32.mrf.mxu1 }
 0x33d   : > { %v821_v52 = vmul.f32 0.35355338, %v817_v51  ;;  %v742_v53 = vpop.f32.mrf.mxu3  ;;  %v1169_v51 = vld [vmem:[%s1711_s5 + $0x8] sm:$0xff] }
 0x33f   : > { %v822_v54 = vsel %vm571_vm3, %v821_v52, -inf }
 0x340   : > { %823 = vmax.xlane.f32.xlu1 %v822_v54 }
 0x344   : > { %v819_v55 = vpop.f32.mrf.mxu1 }
 0x351   : > { %442 = vperm.xlu2 %1242, %v404_v56   ;;  %v1245_v56 = vld [vmem:[%s1693_s6] ss:$0 sm:$0xff] }
 0x3ac   : > { %v747_v58 = vpop.xlane.xlu2 %746 }
 0x3ad   : > { %v748_v59 = vsub.f32 %v744_v49, %v747_v58 }
 0x3af   : > { %v749_v60 = vmul.f32 1.442695, %v748_v59 }
 0x3b1   : > { %1256 = vpow2.f32 %v749_v60 }
 0x3b3   : > { %v824_v62 = vpop.xlane.xlu1 %823 }
 0x3b4   : > { %v825_v63 = vsub.f32 %v821_v52, %v824_v62  ;;  %v443_v0 = vpop.permute.xlu2 %442  ;;  %v1168_v52 = vld [vmem:[%s1711_s5] sm:$0xff]  ;;  %v1387_v62 = vmov 32.0  }
 0x3b5   : > { %v508_v1 = vadd.f32 %v507_v61, %v443_v0 }
 0x3b6   : > { %v826_v2 = vmul.f32 1.442695, %v825_v63 }
 0x3b7   : > { %v1257_v3 = vpop.eup %1256  ;;  %v517_v5 = vpack.c.bf16 %v508_v1, %v508_v1 }
 0x3b8   : > { %1258 = vpow2.f32 %v826_v2  ;;  %v751_v6 = vsel %vm571_vm3, %v1257_v3, 0.0 }
 0x3b9   : > { %526 = vst.msk [vmem:[#allocation2 + $0x1c] sm:$0xf] %vm518_vm1, %v517_v5  ;;  %752 = vadd.xlane.f32.xlu0 %v751_v6 }
 0x3be   : > { %v1259_v7 = vpop.eup %1258 }
 0x3bf   : > { %v828_v8 = vsel %vm571_vm3, %v1259_v7, 0.0 }
 0x3c0   : > { %829 = vadd.xlane.f32.xlu1 %v828_v8  ;;  %v799_v9 = vld [vmem:[#allocation2 + $0x1c] sm:$0xf] }
 0x3c1   : > { %v853_v10 = vsel %vm571_vm3, %v799_v9, 0 }
 0x3c2   : > { %862 = vmatpush.bf16.xpose.msra.mxu3 %v853_v10 }
 0x3d9   : > { %437 = vperm.xlu1 %1243, %v403_v11  }
 0x3e1   : > { %716 = vrot.lane.b32.xlu1 %v714_v12, %s1384_s28 }
 0x42c   : > { %v753_v13 = vpop.xlane.xlu0 %752 }
 0x42d   : > { %1260 = vrcp.f32 %v753_v13  ;;  %v765_v18 = vand.u32 2147483648, %v753_v13  ;;  %v763_v20 = vand.u32 2147483647, %v753_v13  ;;  %vm759_vm13 = vweird.f32 %v753_v13 }
 0x42f   : > { %v766_v23 = vor.u32 1.1754944e-38, %v765_v18  ;;  %vm764_vm15 = vcmp.eq.f32.partialorder %v763_v20, 8.507059e+37 }
 0x433   : > { %v1261_v14 = vpop.eup %1260  ;;  %v830_v15 = vpop.xlane.xlu1 %829 }
 0x434   : > { %v755_v16 = vmul.f32 %v1261_v14, %v753_v13  ;;  %1262 = vrcp.f32 %v830_v15  ;;  %vm760_vm12 = vweird.f32 %v1261_v14  ;;  %v842_v29 = vand.u32 2147483648, %v830_v15 }
 0x435   : > { %vm761_vm14 = vmor %vm759_vm13, %vm760_vm12  ;;  %v840_v31 = vand.u32 2147483647, %v830_v15  ;;  %vm836_vm4 = vweird.f32 %v830_v15  ;;  %1264 = vrcp.f32 %v1387_v62 }
 0x436   : > { %v756_v17 = vsub.f32 1.0, %v755_v16  ;;  %v843_v35 = vor.u32 1.1754944e-38, %v842_v29 }
 0x437   : > { %vm841_vm6 = vcmp.eq.f32.partialorder %v840_v31, 8.507059e+37 }
 0x438   : > { %v757_v19 = vmul.f32 %v1261_v14, %v756_v17 }
 0x43a   : > { %v1263_v21 = vpop.eup %1262  ;;  %v758_v22 = vadd.f32 %v1261_v14, %v757_v19 }
 0x43b   : > { %v832_v24 = vmul.f32 %v1263_v21, %v830_v15  ;;  %vm837_vm2 = vweird.f32 %v1263_v21  ;;  %v1265_v63 = vpop.eup %1264 }
 0x43c   : > { %v762_v25 = vsel %vm761_vm14, %v1261_v14, %v758_v22  ;;  %vm838_vm5 = vmor %vm836_vm4, %vm837_vm2  ;;  %v917_v0 = vmul.f32 32.0, %v1265_v63  ;;  %vm921_vm8 = vweird.f32 %v1265_v63 }
 0x43d   : > { %v767_v26 = vsel %vm764_vm15, %v766_v23, %v762_v25  ;;  %v833_v27 = vsub.f32 1.0, %v832_v24 }
 0x43e   : > { %v768_v28 = vmul.f32 %v1257_v3, %v767_v26  ;;  %v918_v1 = vsub.f32 1.0, %v917_v0 }
 0x43f   : > { %v834_v30 = vmul.f32 %v1263_v21, %v833_v27 }
 0x440   : > { %v769_v32 = vpack.c.bf16 %v768_v28, %v768_v28  ;;  %v919_v2 = vmul.f32 %v1265_v63, %v918_v1 }
 0x441   : > { %v835_v34 = vadd.f32 %v1263_v21, %v834_v30 }
 0x442   : > { %1141 = vst.msk [vmem:[%s1573_s11 + $0x8] sm:$0xf] %vm518_vm1, %v769_v32  ;;  %v920_v3 = vadd.f32 %v1265_v63, %v919_v2 }
 0x443   : > { %v839_v36 = vsel %vm838_vm5, %v1263_v21, %v835_v34 }
 0x444   : > { %v844_v37 = vsel %vm841_vm6, %v843_v35, %v839_v36  ;;  %v922_v5 = vsel %vm921_vm8, %v1265_v63, %v920_v3 }
 0x445   : > { %v845_v38 = vmul.f32 %v1259_v7, %v844_v37 }
 0x447   : > { %v846_v39 = vpack.c.bf16 %v845_v38, %v845_v38 }
 0x449   : > { %1145 = vmatmul.msk.bf16.vlgmr.msra.gmra.mxu3 %vm571_vm3, %v846_v39  ;;  %1144 = vst.msk [vmem:[%s1573_s11 + $0xc] sm:$0xf] %vm518_vm1, %v846_v39 }
 0x44b   : > { %v438_v33 = vpop.permute.xlu1 %437 }
 0x44c   : > { %v506_v40 = vadd.f32 %v1595_v57, %v438_v33 }
 0x44e   : > { %v516_v41 = vpack.c.bf16 %v506_v40, %v506_v40 }
 0x450   : > { %525 = vst.msk [vmem:[#allocation2 + $0x18] sm:$0xf] %vm518_vm1, %v516_v41  ;;  %vm796_vm1 = vcmask 191616  }
 0x453   : > { %v717_v42 = vpop.permute.xlu1 %716 }
 0x454   : > { %720 = vst.msk [vmem:[#allocation3] sm:$0xf] %vm719_vm7, %v717_v42 }
 0x457   : > { %v722_v43 = vld [vmem:[#allocation2 + $0x18] sm:$0xf] }
 0x458   : > { %v776_v44 = vsel %vm571_vm3, %v722_v43, 0 }
 0x459   : > { %785 = vmatpush.bf16.xpose.msra.mxu2 %v776_v44 }
 0x460   : > { %1142 = vmatmul.msk.bf16.vlgmr.msra.gmra.mxu2 %vm571_vm3, %v769_v32  ;;  %vm873_vm3 = vcmask 257216  }
 0x461   : > { %905 = vmatpush.bf16.msrb.mxu2 %v1169_v51 }
 0x465   : > { %906 = vmatpush.bf16.msrb.mxu2 %v1168_v52 }
 0x4cc   : > { %v864_v45 = vpop.f32.mrf.mxu3 }
 0x4cd   : > { %v868_v46 = vpack.c.bf16 %v864_v45, %v864_v45 }
 0x4cf   : > { %870 = vrot.lane.b32.xlu1 %v868_v46, %s1385_s30  ;;  %s1170_s30 = sshll.u32 %s1370_s16, 4 }
 0x4d0   : > { %s986_s20 = scalar_lea.hbm %s1697_s10, %s1170_s30 }
 0x4d1   : > { %s989_s24 = sshll.u32 %s986_s20, 4  ;;  %s990_s24 = int_to_ptr.hbm [resolvable:$true] %s989_s24 }
 0x4d2   : > { %s1282_s28 = sshra.s32 %s990_s24, 4  ;;  %s1283_s28 = int_to_ptr.hbm [resolvable:$true] %s1282_s28 }
 0x4d3   : > { %s1284_s0 = scalar_lea.hbm %s1283_s28, 16  ;;  %p1289_p1 = scmp.lt.s32.totalorder %s1283_s28, %s1697_s10 }
 0x4d4   : > { %v866_v47 = vpop.f32.mrf.mxu3  ;;  %p1285_p12 = scmp.ne.s32.totalorder %s1283_s28, %s1284_s0  ;;  %p1290_p2 = scmp.lt.s32.totalorder %s1288_s3, %s1284_s0 }
 0x4d6   : > { %p1286_p13 = pnand %p1285_p12, %p1485_p4  ;;  %p1291_p3 = por %p1290_p2, %p1289_p1 }
 0x4d8   : > { %p1287_p0 = pneg %p1286_p13 }
 0x4da   : > { %p1292_p5 = pnand %p1291_p3, %p1287_p0 }
 0x4e3   : > { %v787_v48 = vpop.f32.mrf.mxu2 }
 0x4e4   : > { %v791_v49 = vpack.c.bf16 %v787_v48, %v787_v48 }
 0x4e6   : > { %793 = vrot.lane.b32.xlu0 %v791_v49, %s1386_s12 }
 0x4eb   : > { %v789_v50 = vpop.f32.mrf.mxu2 }
 0x541   : > { %v871_v54 = vpop.permute.xlu1 %870 }
 0x558   : > { %v794_v53 = vpop.permute.xlu0 %793 }
 0x559   : > { %797 = vst.msk [vmem:[#allocation3] sm:$0xf] %vm796_vm1, %v794_v53 }
 0x55a   : > { %874 = vst.msk [vmem:[#allocation3] sm:$0xf] %vm873_vm3, %v871_v54 }
 0x561   : > { %v875_v55 = vld [vmem:[#allocation3] sm:$0xf] }
 0x562   : > { %1154 = vmatmul.msk.bf16.vlgmr.msrb.gmra.mxu2 %vm465_vm0, %v875_v55 }
 0x5e5   : > { %v908_v57 = vpop.f32.mrf.mxu2 }
 0x5e6   : > { %v909_v58 = vadd.f32 %v1245_v56, %v908_v57 }
 0x5e8   : > { %v912_v59 = vadd.f32 %v909_v58, %v1514_v4 }
 0x5ea   : > { %v913_v60 = vsel %vm465_vm0, %v912_v59, 0.0 }
 0x5eb   : > { %914 = vadd.xlane.f32.xlu1 %v913_v60 }
 0x5ed   : > { %v910_v61 = vpop.f32.mrf.mxu2 }
 0x65e   : > { %v915_v6 = vpop.xlane.xlu1 %914 }
 0x65f   : > { %v923_v7 = vmul.f32 %v922_v5, %v915_v6 }
 0x661   : > { %v924_v4 = vsub.f32 %v912_v59, %v923_v7 }
 0x663   : > { %v925_v8 = vmul.f32 %v924_v4, %v924_v4 }
 0x665   : > { %v926_v9 = vsel %vm465_vm0, %v925_v8, 0.0 }
 0x666   : > { %927 = vadd.xlane.f32.xlu2 %v926_v9 }
 0x667   : > { %1295 = shalt.err (!%p1292_p5)
}
 0x668   : > { %s1388_s11 = smov 64   ;;  %s1389_s30 = smov 4   ;;  %v1246_v19 = vld [vmem:[%s1694_s7] ss:$0 sm:$0xff] }
 0x669   : > { %1172 = dma.vmem_to_hbm [thread:$0]  (%p1485_p4), %s988_s22, 256, %s990_s24, %s959_s27, %s1388_s11, %s1388_s11, %s1389_s30  }
 0x66a   : > { %s1103_s0 = sshll.u32 %s1569_s29, 3  ;;  %s1157_s1 = sshll.u32 %s1370_s16, 3  ;;  %v1247_v22 = vld [vmem:[%s1695_s8] ss:$0 sm:$0xff] }
 0x66b   : > { %s970_s12 = scalar_lea.hbm %s1696_s9, %s1157_s1  ;;  %s370_s16 = scalar_lea.vmem [#allocation4], %s1103_s0 }
 0x66c   : > { %s972_s22 = sshll.u32 %s370_s16, 4  ;;  %s974_s24 = sshll.u32 %s970_s12, 4  ;;  %s973_s22 = int_to_ptr.vmem [resolvable:$true] %s972_s22  ;;  %s975_s24 = int_to_ptr.hbm [resolvable:$true] %s974_s24 }
 0x66d   : > { %s954_s27 = scalar_lea.sflag [#allocation5], %s1569_s29  ;;  %s1310_s28 = sshra.s32 %s975_s24, 4  ;;  %s1311_s28 = int_to_ptr.hbm [resolvable:$true] %s1310_s28 }
 0x66e   : > { %s1312_s11 = scalar_lea.hbm %s1311_s28, 8  ;;  %s1316_s0 = scalar_lea.hbm %s1696_s9, 16 }
 0x66f   : > { %p1313_p6 = scmp.ne.s32.totalorder %s1311_s28, %s1312_s11  ;;  %p1317_p10 = scmp.lt.s32.totalorder %s1311_s28, %s1696_s9 }
 0x670   : > { %p1318_p11 = scmp.lt.s32.totalorder %s1316_s0, %s1312_s11 }
 0x671   : > { %p1314_p7 = pnand %p1313_p6, %p1485_p4 }
 0x672   : > { %p1319_p12 = por %p1318_p11, %p1317_p10 }
 0x673   : > { %p1315_p9 = pneg %p1314_p7 }
 0x675   : > { %p1320_p13 = pnand %p1319_p12, %p1315_p9 }
 0x6d9   : > { %v928_v10 = vpop.xlane.xlu2 %927 }
 0x6da   : > { %v929_v11 = vmul.f32 %v928_v10, %v922_v5 }
 0x6dc   : > { %v930_v12 = vadd.f32 1e-12, %v929_v11 }
 0x6de   : > { %1266 = vrsqrt.f32 %v930_v12  ;;  %vm937_vm10 = vweird.f32 %v930_v12 }
 0x6e4   : > { %v1267_v13 = vpop.eup %1266 }
 0x6e5   : > { %v932_v14 = vmul.f32 %v1267_v13, %v930_v12  ;;  %vm938_vm9 = vweird.f32 %v1267_v13 }
 0x6e6   : > { %vm939_vm11 = vmor %vm937_vm10, %vm938_vm9 }
 0x6e7   : > { %v933_v15 = vmul.f32 %v1267_v13, %v932_v14 }
 0x6e9   : > { %v934_v16 = vmul.f32 0.5, %v933_v15 }
 0x6eb   : > { %v935_v17 = vsub.f32 1.5, %v934_v16 }
 0x6ed   : > { %v936_v18 = vmul.f32 %v1267_v13, %v935_v17 }
 0x6ef   : > { %v940_v20 = vsel %vm939_vm11, %v1267_v13, %v936_v18 }
 0x6f0   : > { %v941_v21 = vmul.f32 %v940_v20, %v924_v4 }
 0x6f2   : > { %v946_v23 = vmul.f32 %v1246_v19, %v941_v21 }
 0x6f4   : > { %v951_v24 = vadd.f32 %v1247_v22, %v946_v23 }
 0x6f6   : > { %952 = vst.msk [vmem:[%s370_s16] sm:$0xff] %vm465_vm0, %v951_v24 }
 0x6f7   : > { %1323 = shalt.err (!%p1320_p13)
}
 0x6f8   : > { %1171 = dma.vmem_to_hbm [thread:$0]  (%p1485_p4), %s973_s22, 128, %s975_s24, %s954_s27  }
 0x6f9 PF: > { %p1182_p0 = scmp.ge.s32.totalorder %s1378_s18, 2  ;;  %s1004_s29 = sand.u32 1, %s1358_s13  }
 0x6fa   : > { %s1005_s4 = scalar_lea.sflag [#allocation5], %s1004_s29 }
 0x6fb   : > { %p1176_p1 = pnand %p1182_p0, %p1492_p8 }
 0x6fd   : > { %p1177_p2 = pneg %p1176_p1 }
 0x6ff   : > { %1349 = dma.done.wait (%p1177_p2), %s1005_s4, 128  }
 0x700   : > { %1351 = vsyncadd (%p1177_p2), %s1005_s4, 4294967168  ;;  %s1015_s5 = scalar_lea.sflag [#allocation7], %s1004_s29 }
 0x701   : > { %1353 = dma.done.wait (%p1177_p2), %s1015_s5, 256  }
 0x702   : > { %1355 = vsyncadd (%p1177_p2), %s1015_s5, 4294967040  ;;  %s27_s18 = sadd.s32 1, %s1378_s18   ;;  %s1712_s13 = smov %s1362_s14 }
 0x703   : > { %p24_p3 = scmp.ge.s32.totalorder %s27_s18, 4   ;;  %s1713_s14 = smov %s1366_s15 }
 0x704   : > { %s1714_s15 = smov %s1498_s26  ;;  %s1715_s16 = smov %s1374_s17 }
 0x705   : > { %s1716_s17 = smov %s1718_s21  ;;  %26 = sbr.rel (!%p24_p3) target bundleno = 13 (0xd), region = 116 }
 0x70a   :  { %1021 = vsyncpa [#allocation5], 1 }
 0x70b   :  { %1023 = vsyncpa [#allocation5 + $0x1], 1 }
 0x70c   :  { %1024 = vsyncpa [#allocation7], 1 }
 0x70d   :  { %1026 = vsyncpa [#allocation7 + $0x1], 1 }

</bundles_post_ra>
